<compile_context>
chip_gen: v6e
topology: v6e:2x2x1
jax: 0.10.0
libtpu: 0.0.40
codegen_flags: <defaults>
</compile_context>

<pallas_src>
import functools

import jax
import jax.numpy as jnp
from jax.experimental import pallas as pl
from jax.experimental.pallas import tpu as pltpu

INPUT_DIM = 484              # module input width
K_PAD = 512                  # 484 rounded up to a lane-tile multiple for the first MXU dot
H1, H2, HW = 256, 128, 128   # encoder widths (64 padded to 128 for lane density)
N_SLAB = 128                 # fused-head output width inside the kernel (lane dense)
N_OUT = 8                    # HBM output width: [logits(3) | params(3) | value(1) | pad(1)]
MAX_TB = 2048                # VMEM-safe batch-tile cap (v7x: 64 MiB phys / 32 MiB scoped default)


def _round_up(x, m):
    return (x + m - 1) // m * m


def _decision_kernel(x_ref, w1_ref, w2_ref, w3_ref, wh1_ref, wh2_ref, b_ref,
                     out_ref, xk_ref):
    """One batch tile of the full forward pass.

    x_ref:   (TB, 484) f32 raw input block
    w1_ref:  (512, 256) bf16   w2_ref: (256, 128) bf16   w3_ref: (128, 128) bf16
    wh1_ref: (128, 128) bf16 fused head layer 1 (cols 0:96 live)
    wh2_ref: (128, 128) bf16 block-diagonal head layer 2 (cols 0:7 live)
    b_ref:   (8, 256) f32 consolidated biases
    out_ref: (TB, 8) f32 [action logits(3) | action params(3) | value(1) | 0]
    xk_ref:  (TB, 512) bf16 VMEM scratch (padded/cast copy of x)
    """
    f32 = jnp.float32
    bf16 = jnp.bfloat16
    tb = x_ref.shape[0]

    # Fold the 484->512 zero-pad + f32->bf16 cast into the kernel.
    # Re-zero the tail lanes every step: scratch is per-core persistent, and a
    # program_id==0-only init is unsafe under megacore grid sharding.
    xk_ref[:, INPUT_DIM:] = jnp.zeros((tb, K_PAD - INPUT_DIM), bf16)
    xk_ref[:, :INPUT_DIM] = x_ref[...].astype(bf16)
    xk = xk_ref[...]                                                   # (TB, 512) bf16

    # --- encoder: bf16 MXU matmuls, f32 accumulation, f32 bias + ReLU ---
    h = jnp.dot(xk, w1_ref[...], preferred_element_type=f32) + b_ref[0:1, 0:H1]
    h = jnp.maximum(h, 0.0).astype(bf16)                               # (TB, 256)
    h = jnp.dot(h, w2_ref[...], preferred_element_type=f32) + b_ref[1:2, 0:H2]
    h = jnp.maximum(h, 0.0).astype(bf16)                               # (TB, 128)
    enc = jnp.dot(h, w3_ref[...], preferred_element_type=f32) + b_ref[2:3, 0:HW]
    enc = jnp.maximum(enc, 0.0).astype(bf16)                           # (TB, 128), cols 64: == 0

    # --- fused heads: one matmul for all three first layers, one block-diagonal
    # matmul for all three second layers ---
    hh = jnp.dot(enc, wh1_ref[...], preferred_element_type=f32) + b_ref[3:4, 0:HW]
    hh = jnp.maximum(hh, 0.0).astype(bf16)                             # (TB, 128), cols 96: == 0
    slab = jnp.dot(hh, wh2_ref[...], preferred_element_type=f32) + b_ref[4:5, 0:N_SLAB]
    # slab cols: 0:3 action logits, 3:6 action params, 6 value, 7: exactly 0.

    # Only the 8 live lanes go back to HBM (16x less writeback than a 128-wide
    # f32 slab).  Softmax over the 3 logit lanes runs in the wrapper, so there
    # is no per-step EUP tail here.
    out_ref[...] = slab[:, 0:N_OUT]


def prepare_params(p, input_dim=INPUT_DIM):
    """Fuse / pad / cast per-layer params into the kernel layout (done once, offline).

    Input dict: weights stored transposed vs torch, i.e. (in, out), biases (1, out), f32.
    """
    f32 = jnp.float32
    bf16 = jnp.bfloat16

    w1 = jnp.zeros((K_PAD, H1), f32).at[:input_dim, :].set(p["w1"]).astype(bf16)
    w2 = p["w2"].astype(bf16)                                            # (256, 128)
    w3 = jnp.zeros((H2, HW), f32).at[:, :64].set(p["w3"]).astype(bf16)   # out 64 -> 128

    # Head layer 1: enc(64) -> [action(32) | param(32) | value(32) | pad(32)]
    wh1 = (
        jnp.zeros((HW, HW), f32)
        .at[0:64, 0:32].set(p["wa1"])
        .at[0:64, 32:64].set(p["wp1"])
        .at[0:64, 64:96].set(p["wv1"])
        .astype(bf16)
    )
    # Head layer 2: block-diagonal so each head only sees its own hidden block.
    wh2 = (
        jnp.zeros((HW, N_SLAB), f32)
        .at[0:32, 0:3].set(p["wa2"])
        .at[32:64, 3:6].set(p["wp2"])
        .at[64:96, 6:7].set(p["wv2"])
        .astype(bf16)
    )

    biases = (
        jnp.zeros((8, H1), f32)
        .at[0, 0:H1].set(p["b1"][0])
        .at[1, 0:H2].set(p["b2"][0])
        .at[2, 0:64].set(p["b3"][0])
        .at[3, 0:32].set(p["ba1"][0])
        .at[3, 32:64].set(p["bp1"][0])
        .at[3, 64:96].set(p["bv1"][0])
        .at[4, 0:3].set(p["ba2"][0])
        .at[4, 3:6].set(p["bp2"][0])
        .at[4, 6:7].set(p["bv2"][0])
    )
    return {"w1": w1, "w2": w2, "w3": w3, "wh1": wh1, "wh2": wh2, "biases": biases}


def _choose_batch_tile(batch, block_batch):
    bp_min = _round_up(batch, 16)                 # bf16 sublane packing is (16, 128)
    tb = min(_round_up(max(block_batch, 16), 16), bp_min)
    # v7x megacore: keep >= 2 grid steps when each half-tile still has good
    # MXU/DMA occupancy (>= 256 rows).  No effect on v5e/v6e (single TC).
    half = _round_up(-(-bp_min // 2), 16)
    if half >= 256:
        tb = min(tb, half)
    return max(16, min(tb, MAX_TB))


def enhanced_decision_network(x, prep, *, block_batch=1024):
    """x: (B, 484) f32 (bf16 also accepted).  prep: output of prepare_params.

    Returns (action_probs, action_params, state_value)."""
    batch, in_dim = x.shape
    assert in_dim == INPUT_DIM
    tb = _choose_batch_tile(batch, block_batch)
    bp = _round_up(batch, tb)
    grid = (bp // tb,)

    if bp != batch:
        # Only needed for ragged batches; the common case DMAs x completely as-is.
        x = jnp.pad(x, ((0, bp - batch), (0, 0)))

    # Constant index_map -> weights/biases stay VMEM-resident across grid steps.
    weight_spec = lambda a: pl.BlockSpec(a.shape, lambda i: (0, 0))
    # TODO(synk): single-buffer the resident weights (pipeline_mode=pl.Buffered(1))
    # once verified on the target jax version; saves ~0.4 MiB of dead VMEM.

    weights = (prep["w1"], prep["w2"], prep["w3"], prep["wh1"], prep["wh2"], prep["biases"])
    weight_bytes = sum(int(w.size) * w.dtype.itemsize for w in weights)
    flops = 2 * bp * (K_PAD * H1 + H1 * H2 + H2 * HW + HW * HW + HW * N_SLAB)
    bytes_accessed = int(x.size) * x.dtype.itemsize + weight_bytes + bp * N_OUT * 4

    out = pl.pallas_call(
        _decision_kernel,
        out_shape=jax.ShapeDtypeStruct((bp, N_OUT), jnp.float32),
        grid_spec=pltpu.PrefetchScalarGridSpec(
            num_scalar_prefetch=0,
            grid=grid,
            in_specs=[
                pl.BlockSpec((tb, INPUT_DIM), lambda i: (i, 0)),   # raw x, full last dim
                weight_spec(prep["w1"]),
                weight_spec(prep["w2"]),
                weight_spec(prep["w3"]),
                weight_spec(prep["wh1"]),
                weight_spec(prep["wh2"]),
                weight_spec(prep["biases"]),
            ],
            out_specs=pl.BlockSpec((tb, N_OUT), lambda i: (i, 0)),
            scratch_shapes=[pltpu.VMEM((tb, K_PAD), jnp.bfloat16)],
        ),
        compiler_params=pltpu.CompilerParams(dimension_semantics=("parallel",)),
        cost_estimate=pl.CostEstimate(
            flops=flops, transcendentals=0, bytes_accessed=bytes_accessed
        ),
    )(x, *weights)

    logits = out[:batch, 0:3]
    action_probs = jax.nn.softmax(logits, axis=1)   # exact f32 softmax, off the kernel's hot loop
    action_params = out[:batch, 3:6]
    state_value = out[:batch, 6:7]
    return action_probs, action_params, state_value


def init_params(key, input_dim=INPUT_DIM):
    """Deterministic synthetic init; shapes mirror the PyTorch module.
    torch weight (out, in) -> stored transposed here as (in, out)."""
    dims = {
        "w1": (input_dim, 256), "w2": (256, 128), "w3": (128, 64),
        "wa1": (64, 32), "wa2": (32, 3),
        "wp1": (64, 32), "wp2": (32, 3),
        "wv1": (64, 32), "wv2": (32, 1),
    }
    params = {}
    keys = jax.random.split(key, 2 * len(dims))
    for i, (name, (fan_in, fan_out)) in enumerate(dims.items()):
        bound = 1.0 / jnp.sqrt(float(fan_in))
        params[name] = jax.random.uniform(
            keys[2 * i], (fan_in, fan_out), jnp.float32, -bound, bound
        )
        params["b" + name[1:]] = jax.random.uniform(
            keys[2 * i + 1], (1, fan_out), jnp.float32, -bound, bound
        )
    return params


def reference_forward_f32(x, p):
    """Pure-JAX f32 reference of the original PyTorch forward (module semantics)."""
    relu = lambda t: jnp.maximum(t, 0.0)
    dot = functools.partial(jnp.dot, precision=jax.lax.Precision.HIGHEST)
    h = relu(dot(x, p["w1"]) + p["b1"])
    h = relu(dot(h, p["w2"]) + p["b2"])
    enc = relu(dot(h, p["w3"]) + p["b3"])
    logits = dot(relu(dot(enc, p["wa1"]) + p["ba1"]), p["wa2"]) + p["ba2"]
    probs = jax.nn.softmax(logits, axis=1)
    ap = dot(relu(dot(enc, p["wp1"]) + p["bp1"]), p["wp2"]) + p["bp2"]
    sv = dot(relu(dot(enc, p["wv1"]) + p["bv1"]), p["wv2"]) + p["bv2"]
    return probs, ap, sv


def reference_forward_prepared(x, prep, input_dim=INPUT_DIM):
    """Reference that mimics the kernel math exactly (bf16 operands, f32 accumulation)."""
    relu = lambda t: jnp.maximum(t, 0.0)
    dot = lambda a, w: jnp.dot(a.astype(jnp.bfloat16), w, preferred_element_type=jnp.float32)
    b = prep["biases"]
    xp = jnp.zeros((x.shape[0], K_PAD), jnp.float32).at[:, :input_dim].set(x)
    h = relu(dot(xp, prep["w1"]) + b[0:1, 0:H1])
    h = relu(dot(h, prep["w2"]) + b[1:2, 0:H2])
    enc = relu(dot(h, prep["w3"]) + b[2:3, 0:HW])
    hh = relu(dot(enc, prep["wh1"]) + b[3:4, 0:HW])
    slab = dot(hh, prep["wh2"]) + b[4:5, 0:N_SLAB]
    probs = jax.nn.softmax(slab[:, 0:3], axis=1)
    return probs, slab[:, 3:6], slab[:, 6:7]


if __name__ == "__main__":
    key = jax.random.PRNGKey(0)
    k_params, k_x = jax.random.split(key)

    params = init_params(k_params, input_dim=INPUT_DIM)
    prep = prepare_params(params, input_dim=INPUT_DIM)

    def check(batch, block_batch):
        kx = jax.random.fold_in(k_x, batch)
        x = jax.random.normal(kx, (batch, INPUT_DIM), jnp.float32)
        probs, action_params, value = jax.block_until_ready(
            enhanced_decision_network(x, prep, block_batch=block_batch)
        )
        assert probs.shape == (batch, 3)
        assert action_params.shape == (batch, 3)
        assert value.shape == (batch, 1)

        # Tight check: kernel vs a reference using the same bf16 weights / f32 accumulation.
        tp, ta, tv = reference_forward_prepared(x, prep)
        assert jnp.allclose(probs, tp, atol=5e-3, rtol=5e-3)
        assert jnp.allclose(action_params, ta, atol=5e-3, rtol=5e-3)
        assert jnp.allclose(value, tv, atol=5e-3, rtol=5e-3)

        # Sanity check: kernel (bf16 weights) vs the original f32 module semantics.
        fp, fa, fv = reference_forward_f32(x, params)
        assert jnp.allclose(probs, fp, atol=5e-2, rtol=5e-2)
        assert jnp.allclose(action_params, fa, atol=5e-2, rtol=5e-2)
        assert jnp.allclose(value, fv, atol=5e-2, rtol=5e-2)

        # Exact wrapper-side softmax: rows sum to 1.
        assert jnp.allclose(jnp.sum(probs, axis=1), 1.0, atol=1e-5)

    check(batch=16, block_batch=1024)   # single grid step, no batch padding
    check(batch=48, block_batch=16)     # 3-step pipelined grid, VMEM-resident weights

    print("KERNEL_OK")
</pallas_src>

<mosaic_0001>
module attributes {stable_mosaic.version = 11 : i64} {
  func.func @_decision_kernel(%arg0: i32, %arg1: memref<16x484xf32, #tpu.memory_space<vmem>>, %arg2: memref<512x256xbf16, #tpu.memory_space<vmem>>, %arg3: memref<256x128xbf16, #tpu.memory_space<vmem>>, %arg4: memref<128x128xbf16, #tpu.memory_space<vmem>>, %arg5: memref<128x128xbf16, #tpu.memory_space<vmem>>, %arg6: memref<128x128xbf16, #tpu.memory_space<vmem>>, %arg7: memref<8x256xf32, #tpu.memory_space<vmem>>, %arg8: memref<16x8xf32, #tpu.memory_space<vmem>>, %arg9: memref<16x512xbf16, #tpu.memory_space<vmem>>) attributes {dimension_semantics = [#tpu.dimension_semantics<parallel>], iteration_bounds = array<i64: 1>, scalar_prefetch = 0 : i64, scratch_operands = 1 : i64, tpu.core_type = #tpu.core_type<tc>, window_params = [{transform_indices = @transform_0, window_bounds = array<i64: 16, 484>}, {pipeline_mode = #tpu.pipeline_mode<synchronous>, transform_indices = @transform_1, window_bounds = array<i64: 512, 256>}, {pipeline_mode = #tpu.pipeline_mode<synchronous>, transform_indices = @transform_2, window_bounds = array<i64: 256, 128>}, {pipeline_mode = #tpu.pipeline_mode<synchronous>, transform_indices = @transform_3, window_bounds = array<i64: 128, 128>}, {pipeline_mode = #tpu.pipeline_mode<synchronous>, transform_indices = @transform_4, window_bounds = array<i64: 128, 128>}, {pipeline_mode = #tpu.pipeline_mode<synchronous>, transform_indices = @transform_5, window_bounds = array<i64: 128, 128>}, {pipeline_mode = #tpu.pipeline_mode<synchronous>, transform_indices = @transform_6, window_bounds = array<i64: 8, 256>}, {transform_indices = @transform_7, window_bounds = array<i64: 16, 8>}]} {
    %cst = arith.constant 0.000000e+00 : bf16
    %0 = vector.broadcast %cst : bf16 to vector<16x28xbf16>
    %c0 = arith.constant 0 : index
    %c484 = arith.constant 484 : index
    %1 = vector.load %arg9[%c0, %c484] : memref<16x512xbf16, #tpu.memory_space<vmem>>, vector<16x28xbf16>
    tpu.vector_store %arg9[%c0, %c484], %0 {strides = array<i32>} : memref<16x512xbf16, #tpu.memory_space<vmem>>, vector<16x28xbf16>,
    %c0_0 = arith.constant 0 : index
    %c0_1 = arith.constant 0 : index
    %2 = vector.load %arg1[%c0_0, %c0_1] : memref<16x484xf32, #tpu.memory_space<vmem>>, vector<16x484xf32>
    %3 = arith.truncf %2 : vector<16x484xf32> to vector<16x484xbf16>
    %c0_2 = arith.constant 0 : index
    %c0_3 = arith.constant 0 : index
    %4 = vector.load %arg9[%c0_2, %c0_3] : memref<16x512xbf16, #tpu.memory_space<vmem>>, vector<16x484xbf16>
    tpu.vector_store %arg9[%c0_2, %c0_3], %3 {strides = array<i32>} : memref<16x512xbf16, #tpu.memory_space<vmem>>, vector<16x484xbf16>,
    %c0_4 = arith.constant 0 : index
    %c0_5 = arith.constant 0 : index
    %5 = vector.load %arg9[%c0_4, %c0_5] : memref<16x512xbf16, #tpu.memory_space<vmem>>, vector<16x512xbf16>
    %c0_6 = arith.constant 0 : index
    %c0_7 = arith.constant 0 : index
    %6 = vector.load %arg2[%c0_6, %c0_7] : memref<512x256xbf16, #tpu.memory_space<vmem>>, vector<512x256xbf16>
    %cst_8 = arith.constant dense<0.000000e+00> : vector<16x256xf32>
    %7 = tpu.matmul %5, %6, %cst_8 {dimension_numbers = #tpu.dot_dimension_numbers<[1], [0], [0], [1], [0, 0, 1, 1], [], []>} : vector<16x512xbf16>, vector<512x256xbf16>, vector<16x256xf32> -> vector<16x256xf32>
    %c0_9 = arith.constant 0 : index
    %c0_10 = arith.constant 0 : index
    %8 = vector.load %arg7[%c0_9, %c0_10] : memref<8x256xf32, #tpu.memory_space<vmem>>, vector<1x256xf32>
    %9 = vector.broadcast %8 : vector<1x256xf32> to vector<16x256xf32>
    %10 = arith.addf %7, %9 : vector<16x256xf32>
    %cst_11 = arith.constant 0.000000e+00 : f32
    %11 = vector.broadcast %cst_11 : f32 to vector<16x256xf32>
    %12 = arith.maximumf %10, %11 : vector<16x256xf32>
    %13 = arith.truncf %12 : vector<16x256xf32> to vector<16x256xbf16>
    %c0_12 = arith.constant 0 : index
    %c0_13 = arith.constant 0 : index
    %14 = vector.load %arg3[%c0_12, %c0_13] : memref<256x128xbf16, #tpu.memory_space<vmem>>, vector<256x128xbf16>
    %cst_14 = arith.constant dense<0.000000e+00> : vector<16x128xf32>
    %15 = tpu.matmul %13, %14, %cst_14 {dimension_numbers = #tpu.dot_dimension_numbers<[1], [0], [0], [1], [0, 0, 1, 1], [], []>} : vector<16x256xbf16>, vector<256x128xbf16>, vector<16x128xf32> -> vector<16x128xf32>
    %c1 = arith.constant 1 : index
    %c0_15 = arith.constant 0 : index
    %16 = vector.load %arg7[%c1, %c0_15] : memref<8x256xf32, #tpu.memory_space<vmem>>, vector<1x128xf32>
    %17 = vector.broadcast %16 : vector<1x128xf32> to vector<16x128xf32>
    %18 = arith.addf %15, %17 : vector<16x128xf32>
    %cst_16 = arith.constant 0.000000e+00 : f32
    %19 = vector.broadcast %cst_16 : f32 to vector<16x128xf32>
    %20 = arith.maximumf %18, %19 : vector<16x128xf32>
    %21 = arith.truncf %20 : vector<16x128xf32> to vector<16x128xbf16>
    %c0_17 = arith.constant 0 : index
    %c0_18 = arith.constant 0 : index
    %22 = vector.load %arg4[%c0_17, %c0_18] : memref<128x128xbf16, #tpu.memory_space<vmem>>, vector<128x128xbf16>
    %cst_19 = arith.constant dense<0.000000e+00> : vector<16x128xf32>
    %23 = tpu.matmul %21, %22, %cst_19 {dimension_numbers = #tpu.dot_dimension_numbers<[1], [0], [0], [1], [0, 0, 1, 1], [], []>} : vector<16x128xbf16>, vector<128x128xbf16>, vector<16x128xf32> -> vector<16x128xf32>
    %c2 = arith.constant 2 : index
    %c0_20 = arith.constant 0 : index
    %24 = vector.load %arg7[%c2, %c0_20] : memref<8x256xf32, #tpu.memory_space<vmem>>, vector<1x128xf32>
    %25 = vector.broadcast %24 : vector<1x128xf32> to vector<16x128xf32>
    %26 = arith.addf %23, %25 : vector<16x128xf32>
    %cst_21 = arith.constant 0.000000e+00 : f32
    %27 = vector.broadcast %cst_21 : f32 to vector<16x128xf32>
    %28 = arith.maximumf %26, %27 : vector<16x128xf32>
    %29 = arith.truncf %28 : vector<16x128xf32> to vector<16x128xbf16>
    %c0_22 = arith.constant 0 : index
    %c0_23 = arith.constant 0 : index
    %30 = vector.load %arg5[%c0_22, %c0_23] : memref<128x128xbf16, #tpu.memory_space<vmem>>, vector<128x128xbf16>
    %cst_24 = arith.constant dense<0.000000e+00> : vector<16x128xf32>
    %31 = tpu.matmul %29, %30, %cst_24 {dimension_numbers = #tpu.dot_dimension_numbers<[1], [0], [0], [1], [0, 0, 1, 1], [], []>} : vector<16x128xbf16>, vector<128x128xbf16>, vector<16x128xf32> -> vector<16x128xf32>
    %c3 = arith.constant 3 : index
    %c0_25 = arith.constant 0 : index
    %32 = vector.load %arg7[%c3, %c0_25] : memref<8x256xf32, #tpu.memory_space<vmem>>, vector<1x128xf32>
    %33 = vector.broadcast %32 : vector<1x128xf32> to vector<16x128xf32>
    %34 = arith.addf %31, %33 : vector<16x128xf32>
    %cst_26 = arith.constant 0.000000e+00 : f32
    %35 = vector.broadcast %cst_26 : f32 to vector<16x128xf32>
    %36 = arith.maximumf %34, %35 : vector<16x128xf32>
    %37 = arith.truncf %36 : vector<16x128xf32> to vector<16x128xbf16>
    %c0_27 = arith.constant 0 : index
    %c0_28 = arith.constant 0 : index
    %38 = vector.load %arg6[%c0_27, %c0_28] : memref<128x128xbf16, #tpu.memory_space<vmem>>, vector<128x128xbf16>
    %cst_29 = arith.constant dense<0.000000e+00> : vector<16x128xf32>
    %39 = tpu.matmul %37, %38, %cst_29 {dimension_numbers = #tpu.dot_dimension_numbers<[1], [0], [0], [1], [0, 0, 1, 1], [], []>} : vector<16x128xbf16>, vector<128x128xbf16>, vector<16x128xf32> -> vector<16x128xf32>
    %c4 = arith.constant 4 : index
    %c0_30 = arith.constant 0 : index
    %40 = vector.load %arg7[%c4, %c0_30] : memref<8x256xf32, #tpu.memory_space<vmem>>, vector<1x128xf32>
    %41 = vector.broadcast %40 : vector<1x128xf32> to vector<16x128xf32>
    %42 = arith.addf %39, %41 : vector<16x128xf32>
    %43 = vector.extract_strided_slice %42 {offsets = [0, 0], sizes = [16, 8], strides = [1, 1]} : vector<16x128xf32> to vector<16x8xf32>
    %c0_31 = arith.constant 0 : index
    %c0_32 = arith.constant 0 : index
    %44 = vector.load %arg8[%c0_31, %c0_32] : memref<16x8xf32, #tpu.memory_space<vmem>>, vector<16x8xf32>
    tpu.vector_store %arg8[%c0_31, %c0_32], %43 {strides = array<i32>} : memref<16x8xf32, #tpu.memory_space<vmem>>, vector<16x8xf32>,
    return
  }
  func.func @transform_0(%arg0: i32) -> (i32, i32) {
    %c0_i32 = arith.constant 0 : i32
    %c0_i32_0 = arith.constant 0 : i32
    return %arg0, %c0_i32 : i32, i32
  }
  func.func @transform_1(%arg0: i32) -> (i32, i32) {
    %c0_i32 = arith.constant 0 : i32
    %c0_i32_0 = arith.constant 0 : i32
    %c0_i32_1 = arith.constant 0 : i32
    return %c0_i32, %c0_i32_0 : i32, i32
  }
  func.func @transform_2(%arg0: i32) -> (i32, i32) {
    %c0_i32 = arith.constant 0 : i32
    %c0_i32_0 = arith.constant 0 : i32
    %c0_i32_1 = arith.constant 0 : i32
    return %c0_i32, %c0_i32_0 : i32, i32
  }
  func.func @transform_3(%arg0: i32) -> (i32, i32) {
    %c0_i32 = arith.constant 0 : i32
    %c0_i32_0 = arith.constant 0 : i32
    %c0_i32_1 = arith.constant 0 : i32
    return %c0_i32, %c0_i32_0 : i32, i32
  }
  func.func @transform_4(%arg0: i32) -> (i32, i32) {
    %c0_i32 = arith.constant 0 : i32
    %c0_i32_0 = arith.constant 0 : i32
    %c0_i32_1 = arith.constant 0 : i32
    return %c0_i32, %c0_i32_0 : i32, i32
  }
  func.func @transform_5(%arg0: i32) -> (i32, i32) {
    %c0_i32 = arith.constant 0 : i32
    %c0_i32_0 = arith.constant 0 : i32
    %c0_i32_1 = arith.constant 0 : i32
    return %c0_i32, %c0_i32_0 : i32, i32
  }
  func.func @transform_6(%arg0: i32) -> (i32, i32) {
    %c0_i32 = arith.constant 0 : i32
    %c0_i32_0 = arith.constant 0 : i32
    %c0_i32_1 = arith.constant 0 : i32
    return %c0_i32, %c0_i32_0 : i32, i32
  }
  func.func @transform_7(%arg0: i32) -> (i32, i32) {
    %c0_i32 = arith.constant 0 : i32
    %c0_i32_0 = arith.constant 0 : i32
    return %arg0, %c0_i32 : i32, i32
  }
}

</mosaic_0001>

<bundles_post_ra>
// kernel: tpu_custom_call.1
= control target key start
LH: loop header
LB: loop body
LE: loop exit
PB: predicated region body
PF: predicated region fallthrough
CT: control target
= control target key end

     0   :  { %12 = vsyncpa [#allocation4], 0  ;;  %s1845_s0 = inlined_call_operand.hbm [shape: f32[16,484], index: 0, kind: input, shape index: {}]   ;;  %s1846_s1 = inlined_call_operand.hbm [shape: bf16[512,256], index: 1, kind: input, shape index: {}]   ;;  %s1847_s2 = inlined_call_operand.hbm [shape: bf16[256,128], index: 2, kind: input, shape index: {}]   ;;  %s1848_s3 = inlined_call_operand.hbm [shape: bf16[128,128], index: 3, kind: input, shape index: {}]   ;;  %s1849_s4 = inlined_call_operand.hbm [shape: bf16[128,128], index: 4, kind: input, shape index: {}]   ;;  %s1850_s5 = inlined_call_operand.hbm [shape: bf16[128,128], index: 5, kind: input, shape index: {}]   ;;  %s1851_s6 = inlined_call_operand.hbm [shape: f32[8,256], index: 6, kind: input, shape index: {}]   ;;  %s1852_s7 = inlined_call_operand.vmem [shape: f32[16,8], index: 7, kind: output, shape index: {}]  }
   0x1   :  { %13 = vsyncpa [#allocation6], 0 }
   0x2   :  { %14 = vsyncpa [#allocation9], 0 }
   0x3   :  { %15 = vsyncpa [#allocation12], 0  ;;  %s1712_s24 = smov [#allocation5]  }
   0x4   :  { %s33_s25 = sshll.u32 %s1712_s24, 4  ;;  %s34_s25 = int_to_ptr.vmem [resolvable:$true] %s33_s25 }
   0x5   :  { %s1572_s26 = scalar_lea.vmem %s34_s25, 8192  ;;  %p1577_p1 = scmp.lt.s32.totalorder %s34_s25, %s34_s25 }
   0x6   :  { %p1573_p0 = scmp.ne.s32.totalorder %s34_s25, %s1572_s26  ;;  %p1578_p2 = scmp.lt.s32.totalorder %s1572_s26, %s1572_s26 }
   0x8   :  { %p1579_p3 = por %p1578_p2, %p1577_p1 }
   0xa   :  { %p1580_p4 = pnand %p1579_p3, %p1573_p0 }
   0xc   :  { %1583 = shalt.err (!%p1580_p4)
}
   0xd   :  { %s1713_s27 = smov 128   ;;  %s1714_s28 = smov 8  }
   0xe   :  { %39 = dma.hbm_to_vmem [thread:$0]  %s1846_s1, 8192, %s34_s25, [#allocation6], %s1713_s27, %s1713_s27, %s1714_s28  }
   0xf   :  { %s1715_s8 = smov [#allocation8]   ;;  %s1716_s10 = smov [#allocation11]  }
  0x10   :  { %s57_s9 = sshll.u32 %s1715_s8, 4  ;;  %s81_s11 = sshll.u32 %s1716_s10, 4  ;;  %s58_s9 = int_to_ptr.vmem [resolvable:$true] %s57_s9  ;;  %s82_s11 = int_to_ptr.vmem [resolvable:$true] %s81_s11 }
  0x11   :  { %s1592_s12 = scalar_lea.vmem %s58_s9, 1024  ;;  %p1597_p6 = scmp.lt.s32.totalorder %s58_s9, %s58_s9 }
  0x12   :  { %p1593_p5 = scmp.ne.s32.totalorder %s58_s9, %s1592_s12  ;;  %p1598_p7 = scmp.lt.s32.totalorder %s1592_s12, %s1592_s12 }
  0x14   :  { %p1599_p8 = por %p1598_p7, %p1597_p6 }
  0x16   :  { %p1600_p9 = pnand %p1599_p8, %p1593_p5 }
  0x18   :  { %1603 = shalt.err (!%p1600_p9)
}
  0x19   :  { %s1717_s13 = smov 64   ;;  %s1718_s14 = smov 4  }
  0x1a   :  { %63 = dma.hbm_to_vmem [thread:$0]  %s1848_s3, 1024, %s58_s9, [#allocation9], %s1717_s13, %s1717_s13, %s1718_s14  }
  0x1b   :  { %s1612_s1 = scalar_lea.vmem %s82_s11, 1024  ;;  %p1617_p11 = scmp.lt.s32.totalorder %s82_s11, %s82_s11 }
  0x1c   :  { %p1613_p10 = scmp.ne.s32.totalorder %s82_s11, %s1612_s1  ;;  %p1618_p12 = scmp.lt.s32.totalorder %s1612_s1, %s1612_s1 }
  0x1e   :  { %p1619_p13 = por %p1618_p12, %p1617_p11 }
  0x20   :  { %p1620_p0 = pnand %p1619_p13, %p1613_p10 }
  0x22   :  { %1623 = shalt.err (!%p1620_p0)
}
  0x23   :  { %87 = dma.hbm_to_vmem [thread:$0]  %s1850_s5, 1024, %s82_s11, [#allocation12], %s1717_s13, %s1717_s13, %s1718_s14  }
  0x24   :  { %s1719_s19 = smov [#allocation3]  }
  0x25   :  { %s21_s20 = sshll.u32 %s1719_s19, 4  ;;  %s22_s20 = int_to_ptr.vmem [resolvable:$true] %s21_s20 }
  0x26   :  { %s1632_s21 = scalar_lea.vmem %s22_s20, 1024  ;;  %p1637_p2 = scmp.lt.s32.totalorder %s22_s20, %s22_s20 }
  0x27   :  { %p1633_p1 = scmp.ne.s32.totalorder %s22_s20, %s1632_s21  ;;  %p1638_p3 = scmp.lt.s32.totalorder %s1632_s21, %s1632_s21 }
  0x29   :  { %p1639_p4 = por %p1638_p3, %p1637_p2 }
  0x2b   :  { %p1640_p5 = pnand %p1639_p4, %p1633_p1 }
  0x2d   :  { %1643 = shalt.err (!%p1640_p5)
}
  0x2e   :  { %s1720_s3 = smov 512   ;;  %s1721_s22 = smov 32  }
  0x2f   :  { %27 = dma.hbm_to_vmem [thread:$0]  %s1845_s0, 1024, %s22_s20, [#allocation4], %s1720_s3, %s1720_s3, %s1721_s22  }
  0x30   :  { %s1722_s25 = smov [#allocation7]   ;;  %s1723_s27 = smov [#allocation10]  }
  0x31   :  { %s45_s26 = sshll.u32 %s1722_s25, 4  ;;  %s69_s5 = sshll.u32 %s1723_s27, 4  ;;  %s46_s26 = int_to_ptr.vmem [resolvable:$true] %s45_s26  ;;  %s70_s5 = int_to_ptr.vmem [resolvable:$true] %s69_s5 }
  0x32   :  { %s1652_s28 = scalar_lea.vmem %s46_s26, 2048  ;;  %p1657_p7 = scmp.lt.s32.totalorder %s46_s26, %s46_s26 }
  0x33   :  { %p1653_p6 = scmp.ne.s32.totalorder %s46_s26, %s1652_s28  ;;  %p1658_p8 = scmp.lt.s32.totalorder %s1652_s28, %s1652_s28 }
  0x35   :  { %p1659_p9 = por %p1658_p8, %p1657_p7 }
  0x37   :  { %p1660_p10 = pnand %p1659_p9, %p1653_p6 }
  0x39   :  { %1663 = shalt.err (!%p1660_p10)
}
  0x3a   :  { %51 = dma.hbm_to_vmem [thread:$0]  %s1847_s2, 2048, %s46_s26, [#allocation6], %s1717_s13, %s1717_s13, %s1718_s14  }
  0x3b   :  { %s1672_s0 = scalar_lea.vmem %s70_s5, 1024  ;;  %p1677_p12 = scmp.lt.s32.totalorder %s70_s5, %s70_s5 }
  0x3c   :  { %p1673_p11 = scmp.ne.s32.totalorder %s70_s5, %s1672_s0  ;;  %p1678_p13 = scmp.lt.s32.totalorder %s1672_s0, %s1672_s0 }
  0x3e   :  { %p1679_p0 = por %p1678_p13, %p1677_p12 }
  0x40   :  { %p1680_p1 = pnand %p1679_p0, %p1673_p11 }
  0x42   :  { %1683 = shalt.err (!%p1680_p1)
}
  0x43   :  { %75 = dma.hbm_to_vmem [thread:$0]  %s1849_s4, 1024, %s70_s5, [#allocation9], %s1717_s13, %s1717_s13, %s1718_s14  }
  0x44   :  { %s1724_s10 = smov [#allocation13]  }
  0x45   :  { %s94_s11 = sshll.u32 %s1724_s10, 4  ;;  %s95_s11 = int_to_ptr.vmem [resolvable:$true] %s94_s11 }
  0x46   :  { %s1692_s12 = scalar_lea.vmem %s95_s11, 256  ;;  %p1697_p3 = scmp.lt.s32.totalorder %s95_s11, %s95_s11 }
  0x47   :  { %p1693_p2 = scmp.ne.s32.totalorder %s95_s11, %s1692_s12  ;;  %p1698_p4 = scmp.lt.s32.totalorder %s1692_s12, %s1692_s12 }
  0x49   :  { %p1699_p5 = por %p1698_p4, %p1697_p3 }
  0x4b   :  { %p1700_p6 = pnand %p1699_p5, %p1693_p2 }
  0x4d   :  { %1703 = shalt.err (!%p1700_p6)
}
  0x4e   :  { %97 = dma.hbm_to_vmem [thread:$0]  %s1851_s6, 256, %s95_s11, [#allocation12]  }
  0x4f   :  { %1704 = dma.done.wait [#allocation4], 1024  }
  0x50   :  { %1705 = vsyncadd [#allocation4], 4294966272 }
  0x51   :  { %1706 = dma.done.wait [#allocation6], 10240  }
  0x52   :  { %1707 = vsyncadd [#allocation6], 4294957056 }
  0x53   :  { %1708 = dma.done.wait [#allocation9], 2048  }
  0x54   :  { %1709 = vsyncadd [#allocation9], 4294965248 }
  0x55   :  { %1710 = dma.done.wait [#allocation12], 1280  }
  0x56   :  { %1711 = vsyncadd [#allocation12], 4294966016  ;;  %vm120_vm0 = vcmask 1044256   ;;  %v1725_v0 = vmov 0   ;;  %v1423_v1 = vld [vmem:[#allocation5 + $0x74] ss:$8 sps:$4 sm:$0xff]  }
  0x57   :  { %121 = vst.msk [vmem:[#allocation2 + $0xc] sm:$0xf] %vm120_vm0, %v1725_v0  ;;  %122 = vst.msk [vmem:[#allocation2 + $0x1c] sm:$0xf] %vm120_vm0, %v1725_v0  ;;  %v1425_v2 = vld [vmem:[#allocation5 + $0x174] ss:$8 sps:$4 sm:$0xff]   ;;  %582 = vmatprep.subr.bf16.mxu0 %v1423_v1 }
  0x58   :  { %v1427_v3 = vld [vmem:[#allocation5 + $0x70] ss:$8 sps:$4 sm:$0xff]   ;;  %625 = vmatprep.subr.bf16.mxu1 %v1425_v2  ;;  %v1429_v5 = vld [vmem:[#allocation5 + $0x64] ss:$8 sps:$4 sm:$0xff]   ;;  %v1433_v7 = vld [vmem:[#allocation5 + $0x60] ss:$8 sps:$4 sm:$0xff]  }
  0x59   :  { %v1428_v4 = vld [vmem:[#allocation5 + $0x170] ss:$8 sps:$4 sm:$0xff]   ;;  %583 = vmatpush1.bf16.msra.mxu0 %v1427_v3  ;;  %v1431_v6 = vld [vmem:[#allocation5 + $0x164] ss:$8 sps:$4 sm:$0xff]   ;;  %v1434_v8 = vld [vmem:[#allocation5 + $0x160] ss:$8 sps:$4 sm:$0xff]  }
  0x5a   :  { %626 = vmatpush1.bf16.msra.mxu1 %v1428_v4  ;;  %584 = vmatprep.subr.bf16.mxu0 %v1429_v5  ;;  %v1435_v9 = vld [vmem:[#allocation5 + $0x54] ss:$8 sps:$4 sm:$0xff]   ;;  %v1439_v11 = vld [vmem:[#allocation5 + $0x50] ss:$8 sps:$4 sm:$0xff]   ;;  %v1441_v13 = vld [vmem:[#allocation5 + $0x44] ss:$8 sps:$4 sm:$0xff]  }
  0x5b   :  { %627 = vmatprep.subr.bf16.mxu1 %v1431_v6  ;;  %v1437_v10 = vld [vmem:[#allocation5 + $0x154] ss:$8 sps:$4 sm:$0xff]   ;;  %v1440_v12 = vld [vmem:[#allocation5 + $0x150] ss:$8 sps:$4 sm:$0xff]   ;;  %v1443_v14 = vld [vmem:[#allocation5 + $0x144] ss:$8 sps:$4 sm:$0xff]  }
  0x5c   :  { %v1445_v15 = vld [vmem:[#allocation5 + $0x40] ss:$8 sps:$4 sm:$0xff]   ;;  %v1447_v17 = vld [vmem:[#allocation5 + $0x34] ss:$8 sps:$4 sm:$0xff]   ;;  %v1451_v19 = vld [vmem:[#allocation5 + $0x30] ss:$8 sps:$4 sm:$0xff]  }
  0x5d   :  { %585 = vmatpush1.bf16.msra.mxu0 %v1433_v7  ;;  %v1446_v16 = vld [vmem:[#allocation5 + $0x140] ss:$8 sps:$4 sm:$0xff]   ;;  %v1449_v18 = vld [vmem:[#allocation5 + $0x134] ss:$8 sps:$4 sm:$0xff]   ;;  %v1452_v20 = vld [vmem:[#allocation5 + $0x130] ss:$8 sps:$4 sm:$0xff]  }
  0x5e   :  { %628 = vmatpush1.bf16.msra.mxu1 %v1434_v8  ;;  %586 = vmatprep.subr.bf16.mxu0 %v1435_v9  ;;  %v1453_v21 = vld [vmem:[#allocation5 + $0x24] ss:$8 sps:$4 sm:$0xff]   ;;  %v1457_v23 = vld [vmem:[#allocation5 + $0x20] ss:$8 sps:$4 sm:$0xff]   ;;  %v1459_v25 = vld [vmem:[#allocation5 + $0x14] ss:$8 sps:$4 sm:$0xff]  }
  0x5f   :  { %629 = vmatprep.subr.bf16.mxu1 %v1437_v10  ;;  %v1455_v22 = vld [vmem:[#allocation5 + $0x124] ss:$8 sps:$4 sm:$0xff]   ;;  %v1458_v24 = vld [vmem:[#allocation5 + $0x120] ss:$8 sps:$4 sm:$0xff]   ;;  %v1461_v26 = vld [vmem:[#allocation5 + $0x114] ss:$8 sps:$4 sm:$0xff]  }
  0x60   :  { %v1463_v27 = vld [vmem:[#allocation5 + $0x10] ss:$8 sps:$4 sm:$0xff]   ;;  %v1465_v29 = vld [vmem:[#allocation5 + $0x4] ss:$8 sps:$4 sm:$0xff]   ;;  %v1469_v31 = vld [vmem:[#allocation5] ss:$8 sps:$4 sm:$0xff]  }
  0x61   :  { %587 = vmatpush1.bf16.msra.mxu0 %v1439_v11  ;;  %v1464_v28 = vld [vmem:[#allocation5 + $0x110] ss:$8 sps:$4 sm:$0xff]   ;;  %v1467_v30 = vld [vmem:[#allocation5 + $0x104] ss:$8 sps:$4 sm:$0xff]   ;;  %v1470_v32 = vld [vmem:[#allocation5 + $0x100] ss:$8 sps:$4 sm:$0xff]  }
  0x62   :  { %630 = vmatpush1.bf16.msra.mxu1 %v1440_v12  ;;  %588 = vmatprep.subr.bf16.mxu0 %v1441_v13  ;;  %v1471_v33 = vld [vmem:[#allocation5 + $0xf4] ss:$8 sps:$4 sm:$0xff]   ;;  %v1475_v35 = vld [vmem:[#allocation5 + $0xf0] ss:$8 sps:$4 sm:$0xff]   ;;  %v1477_v37 = vld [vmem:[#allocation5 + $0xe4] ss:$8 sps:$4 sm:$0xff]  }
  0x63   :  { %631 = vmatprep.subr.bf16.mxu1 %v1443_v14  ;;  %v1473_v34 = vld [vmem:[#allocation5 + $0x1f4] ss:$8 sps:$4 sm:$0xff]   ;;  %v1476_v36 = vld [vmem:[#allocation5 + $0x1f0] ss:$8 sps:$4 sm:$0xff]   ;;  %v1479_v38 = vld [vmem:[#allocation5 + $0x1e4] ss:$8 sps:$4 sm:$0xff]  }
  0x64   :  { %v1481_v39 = vld [vmem:[#allocation5 + $0xe0] ss:$8 sps:$4 sm:$0xff]   ;;  %vm156_vm1 = vcmask 1043456   ;;  %v1483_v41 = vld [vmem:[#allocation5 + $0xd4] ss:$8 sps:$4 sm:$0xff]   ;;  %vm157_vm2 = vcmask 818180  }
  0x65   :  { %589 = vmatpush1.bf16.msra.mxu0 %v1445_v15  ;;  %v1482_v40 = vld [vmem:[#allocation5 + $0x1e0] ss:$8 sps:$4 sm:$0xff]   ;;  %v1485_v42 = vld [vmem:[#allocation5 + $0x1d4] ss:$8 sps:$4 sm:$0xff]   ;;  %v1487_v43 = vld [vmem:[#allocation5 + $0xd0] ss:$8 sps:$4 sm:$0xff]  }
  0x66   :  { %632 = vmatpush1.bf16.msra.mxu1 %v1446_v16  ;;  %590 = vmatprep.subr.bf16.mxu0 %v1447_v17  ;;  %v1488_v44 = vld [vmem:[#allocation5 + $0x1d0] ss:$8 sps:$4 sm:$0xff]   ;;  %vm1801_vm3 = vmor %vm157_vm2, %vm156_vm1  ;;  %v1489_v46 = vld [vmem:[#allocation5 + $0xc4] ss:$8 sps:$4 sm:$0xff]   ;;  %vm1727_vm4 = vmmov 0   ;;  %vm1171_vm5 = vcmask 64512  }
  0x67   :  { %633 = vmatprep.subr.bf16.mxu1 %v1449_v18  ;;  %v1491_v47 = vld [vmem:[#allocation5 + $0x1c4] ss:$8 sps:$4 sm:$0xff]   ;;  %v1493_v48 = vld [vmem:[#allocation5 + $0xc0] ss:$8 sps:$4 sm:$0xff]   ;;  %v1495_v51 = vld [vmem:[#allocation5 + $0xb4] ss:$8 sps:$4 sm:$0xff]  }
  0x68   :  { %v1494_v49 = vld [vmem:[#allocation5 + $0x1c0] ss:$8 sps:$4 sm:$0xff]   ;;  %v1497_v52 = vld [vmem:[#allocation5 + $0x1b4] ss:$8 sps:$4 sm:$0xff]   ;;  %v1499_v61 = vld [vmem:[#allocation5 + $0xb0] ss:$8 sps:$4 sm:$0xff]  }
  0x69   :  { %591 = vmatpush1.bf16.msra.mxu0 %v1451_v19  ;;  %v123_v50 = vld [vmem:[#allocation3] sm:$0xff]  ;;  %v124_v53 = vld [vmem:[#allocation3 + $0x8] sm:$0xff]  ;;  %v125_v56 = vld [vmem:[#allocation3 + $0x10] sm:$0xff] }
  0x6a   :  { %634 = vmatpush1.bf16.msra.mxu1 %v1452_v20  ;;  %592 = vmatprep.subr.bf16.mxu0 %v1453_v21  ;;  %v127_v54 = vld [vmem:[#allocation3 + $0x20] sm:$0xff]  ;;  %v128_v55 = vld [vmem:[#allocation3 + $0x28] sm:$0xff]  ;;  %v126_v57 = vld [vmem:[#allocation3 + $0x18] sm:$0xff] }
  0x6b   :  { %635 = vmatprep.subr.bf16.mxu1 %v1455_v22  ;;  %v129_v58 = vld [vmem:[#allocation3 + $0x30] sm:$0xff]  ;;  %v130_v59 = vld [vmem:[#allocation3 + $0x38] sm:$0xff]  ;;  %v1295_v60 = vpack.c.bf16 %v126_v57, %v125_v56  ;;  %v1562_v62 = vpack.c.bf16 %v128_v55, %v124_v53  ;;  %v1501_v1 = vld [vmem:[#allocation5 + $0xa4] ss:$8 sps:$4 sm:$0xff]   ;;  %v1563_v17 = vpack.c.bf16 %v127_v54, %v123_v50 }
  0x6c   :  { %v1297_v63 = vpack.c.bf16 %v130_v59, %v129_v58  ;;  %v1500_v0 = vld [vmem:[#allocation5 + $0x1b0] ss:$8 sps:$4 sm:$0xff]   ;;  %v1503_v2 = vld [vmem:[#allocation5 + $0x1a4] ss:$8 sps:$4 sm:$0xff]   ;;  %v1505_v3 = vld [vmem:[#allocation5 + $0xa0] ss:$8 sps:$4 sm:$0xff]  }
  0x6d   :  { %593 = vmatpush1.bf16.msra.mxu0 %v1457_v23  ;;  %159 = vst.msk [vmem:[#allocation2 + $0x8] sm:$0xff] %vm1801_vm3, %v1295_v60  ;;  %614 = vmatprep.mubr.bf16.mxu0 %v1562_v62  ;;  %v1506_v4 = vld [vmem:[#allocation5 + $0x1a0] ss:$8 sps:$4 sm:$0xff]   ;;  %v1507_v5 = vld [vmem:[#allocation5 + $0x94] ss:$8 sps:$4 sm:$0xff]  }
  0x6e   :  { %636 = vmatpush1.bf16.msra.mxu1 %v1458_v24  ;;  %594 = vmatprep.subr.bf16.mxu0 %v1459_v25  ;;  %161 = vst.msk [vmem:[#allocation2 + $0x18] sm:$0xff] %vm1801_vm3, %v1297_v63  ;;  %v1509_v6 = vld [vmem:[#allocation5 + $0x194] ss:$8 sps:$4 sm:$0xff]   ;;  %v1511_v7 = vld [vmem:[#allocation5 + $0x90] ss:$8 sps:$4 sm:$0xff]   ;;  %v1526_v20 = vld [vmem:[#allocation7 + $0x68] sm:$0xff]  }
  0x6f   :  { %637 = vmatprep.subr.bf16.mxu1 %v1461_v26  ;;  %v1512_v8 = vld [vmem:[#allocation5 + $0x190] ss:$8 sps:$4 sm:$0xff]   ;;  %v1513_v9 = vld [vmem:[#allocation5 + $0x84] ss:$8 sps:$4 sm:$0xff]   ;;  %v1517_v12 = vld [vmem:[#allocation5 + $0x80] ss:$8 sps:$4 sm:$0xff]  }
  0x70   :  { %v1515_v10 = vld [vmem:[#allocation5 + $0x184] ss:$8 sps:$4 sm:$0xff]   ;;  %v1518_v13 = vld [vmem:[#allocation5 + $0x180] ss:$8 sps:$4 sm:$0xff]   ;;  %v1522_v14 = vld [vmem:[#allocation7 + $0x78] sm:$0xff]  }
  0x71   :  { %595 = vmatpush1.bf16.msra.mxu0 %v1463_v27  ;;  %v1523_v16 = vld [vmem:[#allocation7 + $0x38] sm:$0xff]   ;;  %v1524_v18 = vld [vmem:[#allocation7 + $0x70] sm:$0xff]   ;;  %v1527_v21 = vld [vmem:[#allocation7 + $0x28] sm:$0xff]  }
  0x72   :  { %638 = vmatpush1.bf16.msra.mxu1 %v1464_v28  ;;  %596 = vmatprep.subr.bf16.mxu0 %v1465_v29  ;;  %v1525_v19 = vld [vmem:[#allocation7 + $0x30] sm:$0xff]   ;;  %v1528_v22 = vld [vmem:[#allocation7 + $0x60] sm:$0xff]   ;;  %v1530_v24 = vld [vmem:[#allocation7 + $0x58] sm:$0xff]  }
  0x73   :  { %639 = vmatprep.subr.bf16.mxu1 %v1467_v30  ;;  %v1529_v23 = vld [vmem:[#allocation7 + $0x20] sm:$0xff]   ;;  %v1531_v25 = vld [vmem:[#allocation7 + $0x18] sm:$0xff]   ;;  %v1532_v26 = vld [vmem:[#allocation7 + $0x50] sm:$0xff]  }
  0x74   :  { %v1533_v27 = vld [vmem:[#allocation7 + $0x10] sm:$0xff]   ;;  %v1534_v28 = vld [vmem:[#allocation7 + $0x48] sm:$0xff]   ;;  %v1536_v30 = vld [vmem:[#allocation7 + $0x40] sm:$0xff]  }
  0x75   :  { %597 = vmatpush1.bf16.msra.mxu0 %v1469_v31  ;;  %v1521_v11 = vld [vmem:[#allocation2 + $0xc] ss:$16 sps:$4 sm:$0xff]   ;;  %v1519_v15 = vld [vmem:[#allocation2 + $0x8] ss:$16 sps:$4 sm:$0xff]   ;;  %v1537_v31 = vld [vmem:[#allocation7] sm:$0xff]  }
  0x76   :  { %640 = vmatpush1.bf16.msra.mxu1 %v1470_v32  ;;  %598 = vmatprep.subr.bf16.mxu0 %v1471_v33  ;;  %v1535_v29 = vld [vmem:[#allocation7 + $0x8] sm:$0xff]   ;;  %v1538_v32 = vld [vmem:[#allocation8 + $0x38] sm:$0xff]   ;;  %v1726_v33 = vmov 0.0  }
  0x77   :  { %641 = vmatprep.subr.bf16.mxu1 %v1473_v34  ;;  %657 = vmatprep.mubr.bf16.mxu1 %v1521_v11  ;;  %v1539_v34 = vld [vmem:[#allocation8 + $0x30] sm:$0xff]  }
  0x79   :  { %599 = vmatpush2.bf16.msra.mxu0 %v1475_v35  ;;  %v1540_v35 = vld [vmem:[#allocation8 + $0x28] sm:$0xff]  }
  0x7a   :  { %642 = vmatpush2.bf16.msra.mxu1 %v1476_v36  ;;  %600 = vmatprep.subr.bf16.mxu0 %v1477_v37  ;;  %v1541_v36 = vld [vmem:[#allocation8 + $0x20] sm:$0xff]   ;;  %v232_v37 = vlaneseq }
  0x7b   :  { %643 = vmatprep.subr.bf16.mxu1 %v1479_v38 }
  0x7c   :  { %v233_v38 = vshrl.u32 %v232_v37, 7 }
  0x7d   :  { %601 = vmatpush2.bf16.msra.mxu0 %v1481_v39 }
  0x7e   :  { %644 = vmatpush2.bf16.msra.mxu1 %v1482_v40  ;;  %602 = vmatprep.subr.bf16.mxu0 %v1483_v41  ;;  %v238_v39 = vsub.s32 1, %v233_v38  ;;  %v234_v40 = vsub.s32 0, %v233_v38  ;;  %v230_v41 = vld [vmem:[#allocation13] ss:$8 sm:$0x3] }
  0x7f   :  { %645 = vmatprep.subr.bf16.mxu1 %v1485_v42 }
  0x80   :  { %v239_v42 = vrot.slane %v230_v41, %v238_v39 }
  0x81   :  { %603 = vmatpush2.bf16.msra.mxu0 %v1487_v43  ;;  %v235_v43 = vrot.slane %v230_v41, %v234_v40 }
  0x82   :  { %646 = vmatpush2.bf16.msra.mxu1 %v1488_v44  ;;  %604 = vmatprep.subr.bf16.mxu0 %v1489_v46 }
  0x83   :  { %647 = vmatprep.subr.bf16.mxu1 %v1491_v47 }
  0x85   :  { %605 = vmatpush2.bf16.msra.mxu0 %v1493_v48 }
  0x86   :  { %648 = vmatpush2.bf16.msra.mxu1 %v1494_v49  ;;  %606 = vmatprep.subr.bf16.mxu0 %v1495_v51 }
  0x87   :  { %649 = vmatprep.subr.bf16.mxu1 %v1497_v52 }
  0x89   :  { %607 = vmatpush2.bf16.msra.mxu0 %v1499_v61 }
  0x8a   :  { %650 = vmatpush2.bf16.msra.mxu1 %v1500_v0  ;;  %608 = vmatprep.subr.bf16.mxu0 %v1501_v1 }
  0x8b   :  { %651 = vmatprep.subr.bf16.mxu1 %v1503_v2  ;;  %v1542_v2 = vld [vmem:[#allocation8 + $0x18] sm:$0xff]  }
  0x8d   :  { %609 = vmatpush2.bf16.msra.mxu0 %v1505_v3  ;;  %v1543_v3 = vld [vmem:[#allocation8 + $0x10] sm:$0xff]  }
  0x8e   :  { %652 = vmatpush2.bf16.msra.mxu1 %v1506_v4  ;;  %610 = vmatprep.subr.bf16.mxu0 %v1507_v5  ;;  %v1544_v4 = vld [vmem:[#allocation8 + $0x8] sm:$0xff]   ;;  %v1545_v5 = vld [vmem:[#allocation8] sm:$0xff]  }
  0x8f   :  { %653 = vmatprep.subr.bf16.mxu1 %v1509_v6  ;;  %v1546_v6 = vld [vmem:[#allocation10 + $0x38] sm:$0xff]  }
  0x91   :  { %611 = vmatpush2.bf16.msra.mxu0 %v1511_v7  ;;  %v1547_v7 = vld [vmem:[#allocation10 + $0x30] sm:$0xff]  }
  0x92   :  { %654 = vmatpush2.bf16.msra.mxu1 %v1512_v8  ;;  %612 = vmatprep.subr.bf16.mxu0 %v1513_v9  ;;  %v1548_v8 = vld [vmem:[#allocation10 + $0x28] sm:$0xff]   ;;  %v1549_v9 = vld [vmem:[#allocation10 + $0x20] sm:$0xff]  }
  0x93   :  { %655 = vmatprep.subr.bf16.mxu1 %v1515_v10  ;;  %v1550_v10 = vld [vmem:[#allocation10 + $0x18] sm:$0xff]  }
  0x95   :  { %613 = vmatpush2.bf16.msra.mxu0 %v1517_v12 }
  0x96   :  { %656 = vmatpush2.bf16.msra.mxu1 %v1518_v13  ;;  %1298 = vmatprep.subr.bf16.mxu0 %v1522_v14  ;;  %v706_v14 = vld [vmem:[#allocation13 + $0x1] ss:$0 sm:$0xff] }
  0x97   :  { %1347 = vmatprep.subr.bf16.mxu1 %v1726_v33 }
  0x98   :  { %615 = vmatmul.mubr.bf16.vlgmr.msra.gmra.mxu0 %v1563_v17 }
  0x99   :  { %658 = vmatmul.mubr.bf16.vlgmr.msra.gmra.mxu1 %v1519_v15  ;;  %1299 = vmatpush3.bf16.msra.mxu0 %v1523_v16 }
  0x9a   :  { %1300 = vmatprep.subr.bf16.mxu0 %v1524_v18  ;;  %1348 = vmatpush3.bf16.msra.mxu1 %v1538_v32 }
  0x9b   :  { %1349 = vmatprep.subr.bf16.mxu1 %v1726_v33  ;;  %1363 = vmatprep.mubr.msk.bf16.mxu1 %vm1727_vm4, %v1726_v33 }
  0x9d   :  { %1301 = vmatpush3.bf16.msra.mxu0 %v1525_v19 }
  0x9e   :  { %1302 = vmatprep.subr.bf16.mxu0 %v1526_v20  ;;  %1350 = vmatpush3.bf16.msra.mxu1 %v1539_v34 }
  0x9f   :  { %1351 = vmatprep.subr.bf16.mxu1 %v1726_v33 }
  0xa1   :  { %1303 = vmatpush3.bf16.msra.mxu0 %v1527_v21 }
  0xa2   :  { %1304 = vmatprep.subr.bf16.mxu0 %v1528_v22  ;;  %1352 = vmatpush3.bf16.msra.mxu1 %v1540_v35 }
  0xa3   :  { %1353 = vmatprep.subr.bf16.mxu1 %v1726_v33 }
  0xa5   :  { %1305 = vmatpush3.bf16.msra.mxu0 %v1529_v23  ;;  %v1551_v23 = vld [vmem:[#allocation10 + $0x10] sm:$0xff]  }
  0xa6   :  { %1306 = vmatprep.subr.bf16.mxu0 %v1530_v24  ;;  %1354 = vmatpush3.bf16.msra.mxu1 %v1541_v36  ;;  %v1552_v24 = vld [vmem:[#allocation10 + $0x8] sm:$0xff]  }
  0xa7   :  { %1355 = vmatprep.subr.bf16.mxu1 %v1726_v33 }
  0xa9   :  { %1307 = vmatpush3.bf16.msra.mxu0 %v1531_v25  ;;  %v1553_v25 = vld [vmem:[#allocation10] sm:$0xff]  }
  0xaa   :  { %1308 = vmatprep.subr.bf16.mxu0 %v1532_v26  ;;  %1356 = vmatpush3.bf16.msra.mxu1 %v1542_v2  ;;  %v1554_v26 = vld [vmem:[#allocation11 + $0x38] sm:$0xff]  }
  0xab   :  { %1357 = vmatprep.subr.bf16.mxu1 %v1726_v33 }
  0xad   :  { %1309 = vmatpush3.bf16.msra.mxu0 %v1533_v27  ;;  %v1555_v27 = vld [vmem:[#allocation11 + $0x30] sm:$0xff]  }
  0xae   :  { %1310 = vmatprep.subr.bf16.mxu0 %v1534_v28  ;;  %1358 = vmatpush3.bf16.msra.mxu1 %v1543_v3  ;;  %v1556_v28 = vld [vmem:[#allocation11 + $0x28] sm:$0xff]  }
  0xaf   :  { %1359 = vmatprep.subr.bf16.mxu1 %v1726_v33 }
  0xb1   :  { %1311 = vmatpush3.bf16.msra.mxu0 %v1535_v29  ;;  %v1557_v29 = vld [vmem:[#allocation11 + $0x20] sm:$0xff]  }
  0xb2   :  { %1312 = vmatprep.subr.bf16.mxu0 %v1536_v30  ;;  %1360 = vmatpush3.bf16.msra.mxu1 %v1544_v4  ;;  %v1558_v30 = vld [vmem:[#allocation11 + $0x18] sm:$0xff]  }
  0xb3   :  { %1361 = vmatprep.subr.bf16.mxu1 %v1726_v33 }
  0xb5   :  { %1313 = vmatpush3.bf16.msra.mxu0 %v1537_v31  ;;  %v863_v31 = vld [vmem:[#allocation13 + $0x2] ss:$0 sm:$0xff] }
  0xb6   :  { %1367 = vmatprep.subr.bf16.mxu0 %v1726_v33  ;;  %1362 = vmatpush3.bf16.msra.mxu1 %v1545_v5 }
  0xb7   :  { %1387 = vmatprep.subr.bf16.mxu1 %v1726_v33 }
 0x158   :  { %v616_v44 = vpop.f32.mrf.mxu0 }
 0x159   :  { %v659_v45 = vpop.f32.mrf.mxu1  ;;  %v617_v49 = vadd.f32 %v616_v44, %v235_v43  ;;  %v1561_v44 = vld [vmem:[#allocation11] sm:$0xff]  }
 0x15a   :  { %v618_v46 = vpop.f32.mrf.mxu0 }
 0x15b   :  { %v661_v47 = vpop.f32.mrf.mxu1  ;;  %v619_v48 = vadd.f32 %v618_v46, %v239_v42  ;;  %v660_v57 = vadd.f32 %v659_v45, %v617_v49  ;;  %v972_v45 = vld [vmem:[#allocation13 + $0x3] ss:$0 sm:$0xff] }
 0x15c   :  { %v620_v50 = vpop.f32.mrf.mxu0 }
 0x15d   :  { %v663_v51 = vpop.f32.mrf.mxu1  ;;  %v621_v52 = vadd.f32 %v620_v50, %v235_v43  ;;  %v662_v54 = vadd.f32 %v661_v47, %v619_v48  ;;  %v668_v63 = vmax.f32 %v660_v57, 0.0  ;;  %v1560_v43 = vld [vmem:[#allocation11 + $0x8] sm:$0xff]  }
 0x15e   :  { %v622_v53 = vpop.f32.mrf.mxu0 }
 0x15f   :  { %v664_v55 = vadd.f32 %v663_v51, %v621_v52  ;;  %v623_v56 = vadd.f32 %v622_v53, %v239_v42  ;;  %v665_v58 = vpop.f32.mrf.mxu1  ;;  %v669_v61 = vmax.f32 %v662_v54, 0.0  ;;  %v1559_v42 = vld [vmem:[#allocation11 + $0x10] sm:$0xff]  }
 0x161   :  { %v666_v59 = vadd.f32 %v665_v58, %v623_v56  ;;  %v670_v60 = vmax.f32 %v664_v55, 0.0  ;;  %v1081_v55 = vld [vmem:[#allocation13 + $0x4] ss:$0 sm:$0xff] }
 0x163   :  { %v671_v62 = vmax.f32 %v666_v59, 0.0  ;;  %v672_v1 = vpack.c.bf16 %v670_v60, %v668_v63 }
 0x165   :  { %v673_v0 = vpack.c.bf16 %v671_v62, %v669_v61 }
 0x167   :  { %835 = vmatprep.mubr.bf16.mxu0 %v673_v0 }
 0x168   :  { %836 = vmatmul.mubr.bf16.vlgmr.msra.gmra.mxu0 %v672_v1 }
 0x169   :  { %1383 = vmatprep.mubr.msk.bf16.mxu0 %vm1727_vm4, %v1726_v33  ;;  %1368 = vmatpush3.bf16.msra.mxu0 %v1546_v6 }
 0x16a   :  { %1369 = vmatprep.subr.bf16.mxu0 %v1726_v33 }
 0x16d   :  { %1370 = vmatpush3.bf16.msra.mxu0 %v1547_v7 }
 0x16e   :  { %1371 = vmatprep.subr.bf16.mxu0 %v1726_v33 }
 0x171   :  { %1372 = vmatpush3.bf16.msra.mxu0 %v1548_v8 }
 0x172   :  { %1373 = vmatprep.subr.bf16.mxu0 %v1726_v33 }
 0x175   :  { %1374 = vmatpush3.bf16.msra.mxu0 %v1549_v9 }
 0x176   :  { %1375 = vmatprep.subr.bf16.mxu0 %v1726_v33 }
 0x179   :  { %1376 = vmatpush3.bf16.msra.mxu0 %v1550_v10 }
 0x17a   :  { %1377 = vmatprep.subr.bf16.mxu0 %v1726_v33 }
 0x17d   :  { %1378 = vmatpush3.bf16.msra.mxu0 %v1551_v23 }
 0x17e   :  { %1379 = vmatprep.subr.bf16.mxu0 %v1726_v33 }
 0x181   :  { %1380 = vmatpush3.bf16.msra.mxu0 %v1552_v24 }
 0x182   :  { %1381 = vmatprep.subr.bf16.mxu0 %v1726_v33 }
 0x185   :  { %1382 = vmatpush3.bf16.msra.mxu0 %v1553_v25 }
 0x228   :  { %v1314_v11 = vpop.f32.mrf.mxu0 }
 0x22a   :  { %v1315_v12 = vpop.f32.mrf.mxu0 }
 0x22b   :  { %v1316_v13 = vadd.f32 %v1315_v12, %v1314_v11 }
 0x22c   :  { %v1317_v15 = vpop.f32.mrf.mxu0 }
 0x22d   :  { %v838_v17 = vadd.f32 %v1316_v13, %v706_v14 }
 0x22e   :  { %v1318_v16 = vpop.f32.mrf.mxu0 }
 0x22f   :  { %v1319_v18 = vadd.f32 %v1318_v16, %v1317_v15  ;;  %v844_v20 = vmax.f32 %v838_v17, 0.0 }
 0x231   :  { %v841_v19 = vadd.f32 %v1319_v18, %v706_v14 }
 0x233   :  { %v845_v21 = vmax.f32 %v841_v19, 0.0 }
 0x235   :  { %v846_v22 = vpack.c.bf16 %v845_v21, %v844_v20 }
 0x237   :  { %1364 = vmatmul.mubr.bf16.vlgmr.msra.gmra.mxu1 %v846_v22 }
 0x238   :  { %1403 = vmatprep.mubr.msk.bf16.mxu1 %vm1727_vm4, %v1726_v33  ;;  %1388 = vmatpush3.bf16.msra.mxu1 %v1554_v26 }
 0x239   :  { %1389 = vmatprep.subr.bf16.mxu1 %v1726_v33 }
 0x23c   :  { %1390 = vmatpush3.bf16.msra.mxu1 %v1555_v27 }
 0x23d   :  { %1391 = vmatprep.subr.bf16.mxu1 %v1726_v33 }
 0x240   :  { %1392 = vmatpush3.bf16.msra.mxu1 %v1556_v28 }
 0x241   :  { %1393 = vmatprep.subr.bf16.mxu1 %v1726_v33 }
 0x244   :  { %1394 = vmatpush3.bf16.msra.mxu1 %v1557_v29 }
 0x245   :  { %1395 = vmatprep.subr.bf16.mxu1 %v1726_v33 }
 0x248   :  { %1396 = vmatpush3.bf16.msra.mxu1 %v1558_v30 }
 0x249   :  { %1397 = vmatprep.subr.bf16.mxu1 %v1726_v33 }
 0x24c   :  { %1398 = vmatpush3.bf16.msra.mxu1 %v1559_v42 }
 0x24d   :  { %1399 = vmatprep.subr.bf16.mxu1 %v1726_v33 }
 0x250   :  { %1400 = vmatpush3.bf16.msra.mxu1 %v1560_v43 }
 0x251   :  { %1401 = vmatprep.subr.bf16.mxu1 %v1726_v33 }
 0x254   :  { %1402 = vmatpush3.bf16.msra.mxu1 %v1561_v44 }
 0x2f7   :  { %v946_v32 = vpop.f32.mrf.mxu1 }
 0x2f8   :  { %v947_v35 = vadd.f32 %v946_v32, %v863_v31 }
 0x2f9   :  { %v1365_v34 = vpop.f32.mrf.mxu1 }
 0x2fa   :  { %v953_v39 = vmax.f32 %v947_v35, 0.0 }
 0x2fb   :  { %v949_v36 = vpop.f32.mrf.mxu1 }
 0x2fc   :  { %v950_v37 = vadd.f32 %v949_v36, %v863_v31 }
 0x2fd   :  { %v1366_v38 = vpop.f32.mrf.mxu1 }
 0x2fe   :  { %v954_v40 = vmax.f32 %v950_v37, 0.0 }
 0x300   :  { %v955_v41 = vpack.c.bf16 %v954_v40, %v953_v39 }
 0x302   :  { %1384 = vmatmul.mubr.bf16.vlgmr.msra.gmra.mxu0 %v955_v41 }
 0x3c2   :  { %v1055_v46 = vpop.f32.mrf.mxu0 }
 0x3c3   :  { %v1056_v48 = vadd.f32 %v1055_v46, %v972_v45 }
 0x3c4   :  { %v1385_v47 = vpop.f32.mrf.mxu0 }
 0x3c5   :  { %v1062_v52 = vmax.f32 %v1056_v48, 0.0 }
 0x3c6   :  { %v1058_v49 = vpop.f32.mrf.mxu0 }
 0x3c7   :  { %v1059_v50 = vadd.f32 %v1058_v49, %v972_v45 }
 0x3c8   :  { %v1386_v51 = vpop.f32.mrf.mxu0 }
 0x3c9   :  { %v1063_v53 = vmax.f32 %v1059_v50, 0.0 }
 0x3cb   :  { %v1064_v54 = vpack.c.bf16 %v1063_v53, %v1062_v52 }
 0x3cd   :  { %1404 = vmatmul.mubr.bf16.vlgmr.msra.gmra.mxu1 %v1064_v54 }
 0x48d   :  { %v1164_v56 = vpop.f32.mrf.mxu1 }
 0x48e   :  { %v1165_v57 = vadd.f32 %v1164_v56, %v1081_v55 }
 0x48f   :  { %v1405_v58 = vpop.f32.mrf.mxu1 }
 0x490   :  { %1172 = vst.msk [vmem:[%s1852_s7] sm:$0xff] %vm1171_vm5, %v1165_v57 }
 0x491   :  { %v1167_v33 = vpop.f32.mrf.mxu1 }
 0x492   :  { %v1168_v59 = vadd.f32 %v1167_v33, %v1081_v55 }
 0x493   :  { %v1406_v60 = vpop.f32.mrf.mxu1 }
 0x494   :  { %1173 = vst.msk [vmem:[%s1852_s7 + $0x8] sm:$0xff] %vm1171_vm5, %v1168_v59 }
 0x495   :  { %1178 = vsyncpa [#allocation4], 1 }
 0x496   :  { %1179 = vsyncpa [#allocation6], 1 }
 0x497   :  { %1180 = vsyncpa [#allocation9], 1 }
 0x498   :  { %1181 = vsyncpa [#allocation12], 1 }

</bundles_post_ra>
